<compile_context>
chip_gen: v5e
topology: v5e:2x2
jax: 0.10.0
libtpu: 0.0.40
codegen_flags: <defaults>
</compile_context>

<pallas_src>
import functools

import jax
import jax.numpy as jnp
from jax import lax
from jax.experimental import pallas as pl
from jax.experimental.pallas import tpu as pltpu


def _round_up(x, m):
    return ((x + m - 1) // m) * m


# ---------------------------------------------------------------------------
# Fused kernel:
#   in-VMEM gather of fused embedding rows (indices scalar-prefetched in SMEM)
#   -> per-modality max_norm renorm via lane masks (EUP rsqrt)
#   -> relu(hs @ W1^T + b1) @ W2^T + b2   (single K=128 MXU pass for layer 1)
# ---------------------------------------------------------------------------
def fused_kernel(idx_ref,            # SMEM (b_pad,) int32   (scalar prefetch)
                 tbl_ref,            # VMEM (V, H0p) fused embedding table
                 w1t_ref, b1_ref,    # VMEM (H0p, H1p), (1, H1p)
                 w2t_ref, b2_ref,    # VMEM (H1p, H2p), (1, H2p)
                 out_ref,            # VMEM (TB, H2p) output tile
                 hs_buf,             # VMEM (TB, H0p) gathered activations
                 *, dv, do):
    tb, h0p = hs_buf.shape
    base = pl.program_id(0) * tb

    # 1) In-VMEM embedding gather: one fused row per batch element, no DMAs.
    def gather_row(r):
        idx = idx_ref[base + r]
        hs_buf[pl.ds(r, 1), :] = tbl_ref[pl.ds(idx, 1), :]

    if tb <= 32:
        # Small tiles: Python unroll -> static store index, dynamic load index.
        for r in range(tb):
            gather_row(r)
    else:
        pl.loop(0, tb)(gather_row)

    hs = hs_buf[...]

    # 2) nn.Embedding(max_norm=3.0) lookup-time semantics for vis & ont lanes.
    lanes = lax.broadcasted_iota(jnp.int32, (tb, h0p), 1)
    in_vis = lanes < dv
    in_ont = (lanes >= dv) & (lanes < dv + do)
    hsq = hs * hs
    ssq_v = jnp.sum(jnp.where(in_vis, hsq, 0.0), axis=-1, keepdims=True)
    ssq_o = jnp.sum(jnp.where(in_ont, hsq, 0.0), axis=-1, keepdims=True)
    sc_v = jnp.where(ssq_v > 9.0, 3.0 * lax.rsqrt(ssq_v), 1.0)
    sc_o = jnp.where(ssq_o > 9.0, 3.0 * lax.rsqrt(ssq_o), 1.0)
    scale = jnp.where(in_vis, sc_v, jnp.where(in_ont, sc_o, 1.0))
    hs = hs * scale

    # 3) Fuse MLP: single K=128 matmul (concat folded into the fused table /
    #    padded W1^T), bias, ReLU, second matmul, bias. Lane-dense 128-wide out.
    z = jnp.dot(hs, w1t_ref[...], preferred_element_type=jnp.float32) + b1_ref[...]
    h = jnp.maximum(z, 0.0)
    out_ref[...] = (jnp.dot(h, w2t_ref[...], preferred_element_type=jnp.float32)
                    + b2_ref[...])


# ---------------------------------------------------------------------------
# One-time parameter layout: fused table, transposed & padded weights/biases.
# ---------------------------------------------------------------------------
def prepare_params(params):
    f32 = jnp.float32
    vis = params["vis_emb"].astype(f32)
    ont = params["ont_emb"].astype(f32)
    ling = params["ling_emb"].astype(f32)
    dv, do, dl = vis.shape[1], ont.shape[1], ling.shape[1]
    h0 = dv + do + dl
    h0p = _round_up(h0, 128)

    # Fused table [V, H0p]: vis | ont | ling | zeros  (concat order of the module)
    table = jnp.pad(jnp.concatenate([vis, ont, ling], axis=-1),
                    ((0, 0), (0, h0p - h0)))

    w1t = params["w1"].astype(f32).T            # [H0, H1]
    w2t = params["w2"].astype(f32).T            # [H1, H2]
    h1, h2 = w1t.shape[1], w2t.shape[1]
    h1p, h2p = _round_up(h1, 128), _round_up(h2, 128)

    prep = {
        "table": table,
        "w1t": jnp.pad(w1t, ((0, h0p - h0), (0, h1p - h1))),
        "b1": jnp.pad(params["b1"].astype(f32).reshape(1, h1),
                      ((0, 0), (0, h1p - h1))),
        "w2t": jnp.pad(w2t, ((0, h1p - h1), (0, h2p - h2))),
        "b2": jnp.pad(params["b2"].astype(f32).reshape(1, h2),
                      ((0, 0), (0, h2p - h2))),
    }
    return prep, (dv, do, dl)


@functools.partial(jax.jit, static_argnames=("dv", "do", "out_dim"))
def likelihood_network_forward(noun_idx, prep, *, dv, do, out_dim):
    table, w1t, b1, w2t, b2 = (prep["table"], prep["w1t"], prep["b1"],
                               prep["w2t"], prep["b2"])
    v, h0p = table.shape
    h1p = w1t.shape[1]
    h2p = w2t.shape[1]

    b = noun_idx.shape[0]
    # Batch tile: multiple of 8, up to 256; split so the grid has >= 2 steps
    # when possible (megacore / v7x: 2 TCs share the "parallel" batch axis).
    tb = min(256, _round_up(b, 8))
    if _round_up(b, tb) // tb < 2 and tb > 8:
        tb = _round_up(max(tb // 2, 8), 8)
    b_pad = _round_up(b, tb)
    idx = jnp.pad(noun_idx.astype(jnp.int32), (0, b_pad - b))

    grid_spec = pltpu.PrefetchScalarGridSpec(
        num_scalar_prefetch=1,
        grid=(b_pad // tb,),
        in_specs=[
            pl.BlockSpec((v, h0p), lambda i, idx_ref: (0, 0)),     # fused table
            pl.BlockSpec((h0p, h1p), lambda i, idx_ref: (0, 0)),   # W1^T
            pl.BlockSpec((1, h1p), lambda i, idx_ref: (0, 0)),     # b1
            pl.BlockSpec((h1p, h2p), lambda i, idx_ref: (0, 0)),   # W2^T
            pl.BlockSpec((1, h2p), lambda i, idx_ref: (0, 0)),     # b2
        ],
        out_specs=pl.BlockSpec((tb, h2p), lambda i, idx_ref: (i, 0)),
        scratch_shapes=[pltpu.VMEM((tb, h0p), jnp.float32)],
    )

    out = pl.pallas_call(
        functools.partial(fused_kernel, dv=dv, do=do),
        grid_spec=grid_spec,
        out_shape=jax.ShapeDtypeStruct((b_pad, h2p), jnp.float32),
        compiler_params=pltpu.CompilerParams(
            dimension_semantics=("parallel",)),
    )(idx, table, w1t, b1, w2t, b2)

    return out[:b, :out_dim]


# ---------------------------------------------------------------------------
# Pure-JAX reference (mirrors the PyTorch module).
# ---------------------------------------------------------------------------
def renorm_rows(rows, max_norm=3.0):
    norms = jnp.sqrt(jnp.sum(rows * rows, axis=-1, keepdims=True))
    scale = jnp.where(norms > max_norm, max_norm / (norms + 1e-7), 1.0)
    return rows * scale


def reference_forward(noun_idx, params):
    hv = renorm_rows(params["vis_emb"][noun_idx], 3.0)
    ho = renorm_rows(params["ont_emb"][noun_idx], 3.0)
    hl = params["ling_emb"][noun_idx]
    hs = jnp.concatenate([hv, ho, hl], axis=-1).astype(jnp.float32)
    z = hs @ params["w1"].T + params["b1"]
    h = jnp.maximum(z, 0.0)
    return h @ params["w2"].T + params["b2"]


if __name__ == "__main__":
    # Small, shape-consistent config:
    #   vocab V=32, batch B=8
    #   vis_hidden_dim=16, ont_hidden_dim=16, ling_hidden_dim=32 -> hidden_dim_0=64
    #   hidden_dim_1=32, hidden_dim_2=16
    V, B = 32, 8
    DV, DO, DL = 16, 16, 32
    H0, H1, H2 = DV + DO + DL, 32, 16

    key = jax.random.PRNGKey(0)
    k_vis, k_ont, k_ling, k_w1, k_b1, k_w2, k_b2, k_idx = jax.random.split(key, 8)

    params = {
        # frozen pretrained embedding tables (synthetic, deterministic)
        "vis_emb": jax.random.normal(k_vis, (V, DV), jnp.float32) * 2.0,
        "ont_emb": jax.random.normal(k_ont, (V, DO), jnp.float32) * 2.0,
        "ling_emb": jax.random.normal(k_ling, (V, DL), jnp.float32),
        # fuse MLP parameters
        "w1": jax.random.normal(k_w1, (H1, H0), jnp.float32) * 0.1,
        "b1": jax.random.normal(k_b1, (H1,), jnp.float32) * 0.1,
        "w2": jax.random.normal(k_w2, (H2, H1), jnp.float32) * 0.1,
        "b2": jax.random.normal(k_b2, (H2,), jnp.float32) * 0.1,
    }

    noun_idx = jax.random.randint(k_idx, (B,), 0, V, dtype=jnp.int32)

    prep, (dv, do, dl) = prepare_params(params)      # one-time layout
    out = likelihood_network_forward(noun_idx, prep, dv=dv, do=do, out_dim=H2)
    out = jax.block_until_ready(out)

    ref = reference_forward(noun_idx, params)
    assert out.shape == (B, H2), out.shape
    assert jnp.allclose(out, ref, atol=1e-2, rtol=1e-2), \
        f"max abs err {jnp.max(jnp.abs(out - ref))}"

    print("KERNEL_OK")
</pallas_src>

<mosaic_0001>
module attributes {stable_mosaic.version = 11 : i64} {
  func.func @fused_kernel(%arg0: i32, %arg1: memref<8xi32, #tpu.memory_space<smem>>, %arg2: memref<32x128xf32, #tpu.memory_space<vmem>>, %arg3: memref<128x128xf32, #tpu.memory_space<vmem>>, %arg4: memref<1x128xf32, #tpu.memory_space<vmem>>, %arg5: memref<128x128xf32, #tpu.memory_space<vmem>>, %arg6: memref<1x128xf32, #tpu.memory_space<vmem>>, %arg7: memref<8x128xf32, #tpu.memory_space<vmem>>, %arg8: memref<8x128xf32, #tpu.memory_space<vmem>>) attributes {dimension_semantics = [#tpu.dimension_semantics<parallel>], iteration_bounds = array<i64: 1>, scalar_prefetch = 1 : i64, scratch_operands = 1 : i64, tpu.core_type = #tpu.core_type<tc>, window_params = [{pipeline_mode = #tpu.pipeline_mode<synchronous>, transform_indices = @transform_0, window_bounds = array<i64: 32, 128>}, {pipeline_mode = #tpu.pipeline_mode<synchronous>, transform_indices = @transform_1, window_bounds = array<i64: 128, 128>}, {pipeline_mode = #tpu.pipeline_mode<synchronous>, transform_indices = @transform_2, window_bounds = array<i64: 1, 128>}, {pipeline_mode = #tpu.pipeline_mode<synchronous>, transform_indices = @transform_3, window_bounds = array<i64: 128, 128>}, {pipeline_mode = #tpu.pipeline_mode<synchronous>, transform_indices = @transform_4, window_bounds = array<i64: 1, 128>}, {transform_indices = @transform_5, window_bounds = array<i64: 8, 128>}]} {
    %c8_i32 = arith.constant 8 : i32
    %0 = arith.muli %arg0, %c8_i32 : i32
    %c0_i32 = arith.constant 0 : i32
    %1 = arith.addi %0, %c0_i32 : i32
    %2 = arith.index_cast %1 : i32 to index
    %3 = memref.load %arg1[%2] : memref<8xi32, #tpu.memory_space<smem>>
    %4 = arith.index_cast %3 : i32 to index
    %c0 = arith.constant 0 : index
    %5 = vector.load %arg2[%4, %c0] : memref<32x128xf32, #tpu.memory_space<vmem>>, vector<1x128xf32>
    %c0_0 = arith.constant 0 : index
    %c0_1 = arith.constant 0 : index
    %6 = vector.load %arg8[%c0_0, %c0_1] : memref<8x128xf32, #tpu.memory_space<vmem>>, vector<1x128xf32>
    tpu.vector_store %arg8[%c0_0, %c0_1], %5 {strides = array<i32>} : memref<8x128xf32, #tpu.memory_space<vmem>>, vector<1x128xf32>,
    %c1_i32 = arith.constant 1 : i32
    %7 = arith.addi %0, %c1_i32 : i32
    %8 = arith.index_cast %7 : i32 to index
    %9 = memref.load %arg1[%8] : memref<8xi32, #tpu.memory_space<smem>>
    %10 = arith.index_cast %9 : i32 to index
    %c0_2 = arith.constant 0 : index
    %11 = vector.load %arg2[%10, %c0_2] : memref<32x128xf32, #tpu.memory_space<vmem>>, vector<1x128xf32>
    %c1 = arith.constant 1 : index
    %c0_3 = arith.constant 0 : index
    %12 = vector.load %arg8[%c1, %c0_3] : memref<8x128xf32, #tpu.memory_space<vmem>>, vector<1x128xf32>
    tpu.vector_store %arg8[%c1, %c0_3], %11 {strides = array<i32>} : memref<8x128xf32, #tpu.memory_space<vmem>>, vector<1x128xf32>,
    %c2_i32 = arith.constant 2 : i32
    %13 = arith.addi %0, %c2_i32 : i32
    %14 = arith.index_cast %13 : i32 to index
    %15 = memref.load %arg1[%14] : memref<8xi32, #tpu.memory_space<smem>>
    %16 = arith.index_cast %15 : i32 to index
    %c0_4 = arith.constant 0 : index
    %17 = vector.load %arg2[%16, %c0_4] : memref<32x128xf32, #tpu.memory_space<vmem>>, vector<1x128xf32>
    %c2 = arith.constant 2 : index
    %c0_5 = arith.constant 0 : index
    %18 = vector.load %arg8[%c2, %c0_5] : memref<8x128xf32, #tpu.memory_space<vmem>>, vector<1x128xf32>
    tpu.vector_store %arg8[%c2, %c0_5], %17 {strides = array<i32>} : memref<8x128xf32, #tpu.memory_space<vmem>>, vector<1x128xf32>,
    %c3_i32 = arith.constant 3 : i32
    %19 = arith.addi %0, %c3_i32 : i32
    %20 = arith.index_cast %19 : i32 to index
    %21 = memref.load %arg1[%20] : memref<8xi32, #tpu.memory_space<smem>>
    %22 = arith.index_cast %21 : i32 to index
    %c0_6 = arith.constant 0 : index
    %23 = vector.load %arg2[%22, %c0_6] : memref<32x128xf32, #tpu.memory_space<vmem>>, vector<1x128xf32>
    %c3 = arith.constant 3 : index
    %c0_7 = arith.constant 0 : index
    %24 = vector.load %arg8[%c3, %c0_7] : memref<8x128xf32, #tpu.memory_space<vmem>>, vector<1x128xf32>
    tpu.vector_store %arg8[%c3, %c0_7], %23 {strides = array<i32>} : memref<8x128xf32, #tpu.memory_space<vmem>>, vector<1x128xf32>,
    %c4_i32 = arith.constant 4 : i32
    %25 = arith.addi %0, %c4_i32 : i32
    %26 = arith.index_cast %25 : i32 to index
    %27 = memref.load %arg1[%26] : memref<8xi32, #tpu.memory_space<smem>>
    %28 = arith.index_cast %27 : i32 to index
    %c0_8 = arith.constant 0 : index
    %29 = vector.load %arg2[%28, %c0_8] : memref<32x128xf32, #tpu.memory_space<vmem>>, vector<1x128xf32>
    %c4 = arith.constant 4 : index
    %c0_9 = arith.constant 0 : index
    %30 = vector.load %arg8[%c4, %c0_9] : memref<8x128xf32, #tpu.memory_space<vmem>>, vector<1x128xf32>
    tpu.vector_store %arg8[%c4, %c0_9], %29 {strides = array<i32>} : memref<8x128xf32, #tpu.memory_space<vmem>>, vector<1x128xf32>,
    %c5_i32 = arith.constant 5 : i32
    %31 = arith.addi %0, %c5_i32 : i32
    %32 = arith.index_cast %31 : i32 to index
    %33 = memref.load %arg1[%32] : memref<8xi32, #tpu.memory_space<smem>>
    %34 = arith.index_cast %33 : i32 to index
    %c0_10 = arith.constant 0 : index
    %35 = vector.load %arg2[%34, %c0_10] : memref<32x128xf32, #tpu.memory_space<vmem>>, vector<1x128xf32>
    %c5 = arith.constant 5 : index
    %c0_11 = arith.constant 0 : index
    %36 = vector.load %arg8[%c5, %c0_11] : memref<8x128xf32, #tpu.memory_space<vmem>>, vector<1x128xf32>
    tpu.vector_store %arg8[%c5, %c0_11], %35 {strides = array<i32>} : memref<8x128xf32, #tpu.memory_space<vmem>>, vector<1x128xf32>,
    %c6_i32 = arith.constant 6 : i32
    %37 = arith.addi %0, %c6_i32 : i32
    %38 = arith.index_cast %37 : i32 to index
    %39 = memref.load %arg1[%38] : memref<8xi32, #tpu.memory_space<smem>>
    %40 = arith.index_cast %39 : i32 to index
    %c0_12 = arith.constant 0 : index
    %41 = vector.load %arg2[%40, %c0_12] : memref<32x128xf32, #tpu.memory_space<vmem>>, vector<1x128xf32>
    %c6 = arith.constant 6 : index
    %c0_13 = arith.constant 0 : index
    %42 = vector.load %arg8[%c6, %c0_13] : memref<8x128xf32, #tpu.memory_space<vmem>>, vector<1x128xf32>
    tpu.vector_store %arg8[%c6, %c0_13], %41 {strides = array<i32>} : memref<8x128xf32, #tpu.memory_space<vmem>>, vector<1x128xf32>,
    %c7_i32 = arith.constant 7 : i32
    %43 = arith.addi %0, %c7_i32 : i32
    %44 = arith.index_cast %43 : i32 to index
    %45 = memref.load %arg1[%44] : memref<8xi32, #tpu.memory_space<smem>>
    %46 = arith.index_cast %45 : i32 to index
    %c0_14 = arith.constant 0 : index
    %47 = vector.load %arg2[%46, %c0_14] : memref<32x128xf32, #tpu.memory_space<vmem>>, vector<1x128xf32>
    %c7 = arith.constant 7 : index
    %c0_15 = arith.constant 0 : index
    %48 = vector.load %arg8[%c7, %c0_15] : memref<8x128xf32, #tpu.memory_space<vmem>>, vector<1x128xf32>
    tpu.vector_store %arg8[%c7, %c0_15], %47 {strides = array<i32>} : memref<8x128xf32, #tpu.memory_space<vmem>>, vector<1x128xf32>,
    %c0_16 = arith.constant 0 : index
    %c0_17 = arith.constant 0 : index
    %49 = vector.load %arg8[%c0_16, %c0_17] : memref<8x128xf32, #tpu.memory_space<vmem>>, vector<8x128xf32>
    %50 = tpu.iota {dimensions = array<i32: 1>} : vector<8x128xi32>
    %c16_i32 = arith.constant 16 : i32
    %51 = vector.broadcast %c16_i32 : i32 to vector<8x128xi32>
    %52 = arith.cmpi slt, %50, %51 : vector<8x128xi32>
    %c16_i32_18 = arith.constant 16 : i32
    %53 = vector.broadcast %c16_i32_18 : i32 to vector<8x128xi32>
    %54 = arith.cmpi sge, %50, %53 : vector<8x128xi32>
    %c32_i32 = arith.constant 32 : i32
    %55 = vector.broadcast %c32_i32 : i32 to vector<8x128xi32>
    %56 = arith.cmpi slt, %50, %55 : vector<8x128xi32>
    %57 = arith.andi %54, %56 : vector<8x128xi1>
    %58 = arith.mulf %49, %49 : vector<8x128xf32>
    %cst = arith.constant 0.000000e+00 : f32
    %59 = vector.broadcast %cst : f32 to vector<8x128xf32>
    %60 = arith.select %52, %58, %59 : vector<8x128xi1>, vector<8x128xf32>
    %cst_19 = arith.constant dense<0.000000e+00> : vector<8xf32>
    %61 = vector.multi_reduction <add>, %60, %cst_19 [1] : vector<8x128xf32> to vector<8xf32>
    %62 = vector.shape_cast %61 : vector<8xf32> to vector<8x1xf32>
    %cst_20 = arith.constant 0.000000e+00 : f32
    %63 = vector.broadcast %cst_20 : f32 to vector<8x128xf32>
    %64 = arith.select %57, %58, %63 : vector<8x128xi1>, vector<8x128xf32>
    %cst_21 = arith.constant dense<0.000000e+00> : vector<8xf32>
    %65 = vector.multi_reduction <add>, %64, %cst_21 [1] : vector<8x128xf32> to vector<8xf32>
    %66 = vector.shape_cast %65 : vector<8xf32> to vector<8x1xf32>
    %cst_22 = arith.constant 9.000000e+00 : f32
    %67 = vector.broadcast %cst_22 : f32 to vector<8x1xf32>
    %68 = arith.cmpf ogt, %62, %67 : vector<8x1xf32>
    %69 = math.rsqrt %62 : vector<8x1xf32>
    %cst_23 = arith.constant 3.000000e+00 : f32
    %70 = vector.broadcast %cst_23 : f32 to vector<8x1xf32>
    %71 = arith.mulf %70, %69 : vector<8x1xf32>
    %cst_24 = arith.constant 1.000000e+00 : f32
    %72 = vector.broadcast %cst_24 : f32 to vector<8x1xf32>
    %73 = arith.select %68, %71, %72 : vector<8x1xi1>, vector<8x1xf32>
    %cst_25 = arith.constant 9.000000e+00 : f32
    %74 = vector.broadcast %cst_25 : f32 to vector<8x1xf32>
    %75 = arith.cmpf ogt, %66, %74 : vector<8x1xf32>
    %76 = math.rsqrt %66 : vector<8x1xf32>
    %cst_26 = arith.constant 3.000000e+00 : f32
    %77 = vector.broadcast %cst_26 : f32 to vector<8x1xf32>
    %78 = arith.mulf %77, %76 : vector<8x1xf32>
    %cst_27 = arith.constant 1.000000e+00 : f32
    %79 = vector.broadcast %cst_27 : f32 to vector<8x1xf32>
    %80 = arith.select %75, %78, %79 : vector<8x1xi1>, vector<8x1xf32>
    %cst_28 = arith.constant 1.000000e+00 : f32
    %81 = vector.shape_cast %80 : vector<8x1xf32> to vector<8x1xf32>
    %82 = vector.broadcast %81 : vector<8x1xf32> to vector<8x128xf32>
    %83 = vector.broadcast %cst_28 : f32 to vector<8x128xf32>
    %84 = arith.select %57, %82, %83 : vector<8x128xi1>, vector<8x128xf32>
    %85 = vector.shape_cast %73 : vector<8x1xf32> to vector<8x1xf32>
    %86 = vector.broadcast %85 : vector<8x1xf32> to vector<8x128xf32>
    %87 = arith.select %52, %86, %84 : vector<8x128xi1>, vector<8x128xf32>
    %88 = arith.mulf %49, %87 : vector<8x128xf32>
    %c0_29 = arith.constant 0 : index
    %c0_30 = arith.constant 0 : index
    %89 = vector.load %arg3[%c0_29, %c0_30] : memref<128x128xf32, #tpu.memory_space<vmem>>, vector<128x128xf32>
    %cst_31 = arith.constant dense<0.000000e+00> : vector<8x128xf32>
    %90 = tpu.matmul %88, %89, %cst_31 {dimension_numbers = #tpu.dot_dimension_numbers<[1], [0], [0], [1], [0, 0, 1, 1], [], []>} : vector<8x128xf32>, vector<128x128xf32>, vector<8x128xf32> -> vector<8x128xf32>
    %c0_32 = arith.constant 0 : index
    %c0_33 = arith.constant 0 : index
    %91 = vector.load %arg4[%c0_32, %c0_33] : memref<1x128xf32, #tpu.memory_space<vmem>>, vector<1x128xf32>
    %92 = vector.broadcast %91 : vector<1x128xf32> to vector<8x128xf32>
    %93 = arith.addf %90, %92 : vector<8x128xf32>
    %cst_34 = arith.constant 0.000000e+00 : f32
    %94 = vector.broadcast %cst_34 : f32 to vector<8x128xf32>
    %95 = arith.maximumf %93, %94 : vector<8x128xf32>
    %c0_35 = arith.constant 0 : index
    %c0_36 = arith.constant 0 : index
    %96 = vector.load %arg5[%c0_35, %c0_36] : memref<128x128xf32, #tpu.memory_space<vmem>>, vector<128x128xf32>
    %cst_37 = arith.constant dense<0.000000e+00> : vector<8x128xf32>
    %97 = tpu.matmul %95, %96, %cst_37 {dimension_numbers = #tpu.dot_dimension_numbers<[1], [0], [0], [1], [0, 0, 1, 1], [], []>} : vector<8x128xf32>, vector<128x128xf32>, vector<8x128xf32> -> vector<8x128xf32>
    %c0_38 = arith.constant 0 : index
    %c0_39 = arith.constant 0 : index
    %98 = vector.load %arg6[%c0_38, %c0_39] : memref<1x128xf32, #tpu.memory_space<vmem>>, vector<1x128xf32>
    %99 = vector.broadcast %98 : vector<1x128xf32> to vector<8x128xf32>
    %100 = arith.addf %97, %99 : vector<8x128xf32>
    %c0_40 = arith.constant 0 : index
    %c0_41 = arith.constant 0 : index
    %101 = vector.load %arg7[%c0_40, %c0_41] : memref<8x128xf32, #tpu.memory_space<vmem>>, vector<8x128xf32>
    tpu.vector_store %arg7[%c0_40, %c0_41], %100 {strides = array<i32>} : memref<8x128xf32, #tpu.memory_space<vmem>>, vector<8x128xf32>,
    return
  }
  func.func @transform_0(%arg0: i32, %arg1: memref<8xi32, #tpu.memory_space<smem>>) -> (i32, i32) {
    %c0_i32 = arith.constant 0 : i32
    %c0_i32_0 = arith.constant 0 : i32
    %c0_i32_1 = arith.constant 0 : i32
    return %c0_i32, %c0_i32_0 : i32, i32
  }
  func.func @transform_1(%arg0: i32, %arg1: memref<8xi32, #tpu.memory_space<smem>>) -> (i32, i32) {
    %c0_i32 = arith.constant 0 : i32
    %c0_i32_0 = arith.constant 0 : i32
    %c0_i32_1 = arith.constant 0 : i32
    return %c0_i32, %c0_i32_0 : i32, i32
  }
  func.func @transform_2(%arg0: i32, %arg1: memref<8xi32, #tpu.memory_space<smem>>) -> (i32, i32) {
    %c0_i32 = arith.constant 0 : i32
    %c0_i32_0 = arith.constant 0 : i32
    %c0_i32_1 = arith.constant 0 : i32
    return %c0_i32, %c0_i32_0 : i32, i32
  }
  func.func @transform_3(%arg0: i32, %arg1: memref<8xi32, #tpu.memory_space<smem>>) -> (i32, i32) {
    %c0_i32 = arith.constant 0 : i32
    %c0_i32_0 = arith.constant 0 : i32
    %c0_i32_1 = arith.constant 0 : i32
    return %c0_i32, %c0_i32_0 : i32, i32
  }
  func.func @transform_4(%arg0: i32, %arg1: memref<8xi32, #tpu.memory_space<smem>>) -> (i32, i32) {
    %c0_i32 = arith.constant 0 : i32
    %c0_i32_0 = arith.constant 0 : i32
    %c0_i32_1 = arith.constant 0 : i32
    return %c0_i32, %c0_i32_0 : i32, i32
  }
  func.func @transform_5(%arg0: i32, %arg1: memref<8xi32, #tpu.memory_space<smem>>) -> (i32, i32) {
    %c0_i32 = arith.constant 0 : i32
    %c0_i32_0 = arith.constant 0 : i32
    return %arg0, %c0_i32 : i32, i32
  }
}

</mosaic_0001>

<bundles_post_ra>
// kernel: likelihood_network_forward.1
= control target key start
LH: loop header
LB: loop body
LE: loop exit
PB: predicated region body
PF: predicated region fallthrough
CT: control target
= control target key end

     0   :  { %s446_s24 = smov [#allocation4]   ;;  %s532_s0 = inlined_call_operand.hbm [shape: s32[8], index: 0, kind: input, shape index: {}]   ;;  %s533_s1 = inlined_call_operand.hbm [shape: f32[32,128], index: 1, kind: input, shape index: {}]   ;;  %s534_s2 = inlined_call_operand.hbm [shape: f32[128,128], index: 2, kind: input, shape index: {}]   ;;  %s535_s3 = inlined_call_operand.hbm [shape: f32[1,128], index: 3, kind: input, shape index: {}]   ;;  %s536_s4 = inlined_call_operand.hbm [shape: f32[128,128], index: 4, kind: input, shape index: {}]   ;;  %s537_s5 = inlined_call_operand.vmem [shape: f32[1,128], index: 5, kind: input, shape index: {}]   ;;  %s538_s6 = inlined_call_operand.hbm [shape: f32[8,128], index: 6, kind: output, shape index: {}]  }
   0x1   :  { %s12_s23 = sshll.u32 %s532_s0, 4  ;;  %s13_s23 = int_to_ptr.hbm [resolvable:$true] %s12_s23 }
   0x2   :  { %15 = dma.hbm_to_smem %s13_s23, 16, %s446_s24, [#allocation3] }
   0x3   :  { %436 = dma.done.wait [#allocation3], 16 }
   0x4   :  { %437 = vsyncadd [#allocation3], 4294967280 }
   0x5   :  { %18 = sfence }
   0x6   :  { %19 = vsyncpa [#allocation6], 0 }
   0x7   :  { %20 = vsyncpa [#allocation9], 0 }
   0x8   :  { %21 = vsyncpa [#allocation12], 0 }
   0x9   :  { %22 = vsyncpa [#allocation7], 0  ;;  %s40_s27 = sshll.u32 %s534_s2, 4  ;;  %s447_s28 = smov [#allocation8]   ;;  %s41_s27 = int_to_ptr.hbm [resolvable:$true] %s40_s27 }
   0xa   :  { %s42_s29 = sshll.u32 %s447_s28, 4  ;;  %s27_s7 = sshll.u32 %s533_s1, 4  ;;  %s43_s29 = int_to_ptr.vmem [resolvable:$true] %s42_s29  ;;  %s28_s7 = int_to_ptr.hbm [resolvable:$true] %s27_s7 }
   0xb   :  { %s448_s8 = smov 128   ;;  %s449_s9 = smov 8  }
   0xc   :  { %48 = dma.hbm_to_vmem [thread:$0]  %s41_s27, 2048, %s43_s29, [#allocation9], %s448_s8, %s448_s8, %s449_s9  }
   0xd   :  { %s450_s10 = smov [#allocation5]   ;;  %s54_s14 = sshll.u32 %s535_s3, 4  ;;  %s55_s14 = int_to_ptr.hbm [resolvable:$true] %s54_s14 }
   0xe   :  { %s29_s11 = sshll.u32 %s450_s10, 4  ;;  %s64_s16 = sshll.u32 %s536_s4, 4  ;;  %s30_s11 = int_to_ptr.vmem [resolvable:$true] %s29_s11  ;;  %s65_s16 = int_to_ptr.hbm [resolvable:$true] %s64_s16 }
   0xf   :  { %35 = dma.hbm_to_vmem [thread:$0]  %s28_s7, 512, %s30_s11, [#allocation6], %s448_s8, %s448_s8, %s449_s9  }
  0x10   :  { %s451_s17 = smov [#allocation10]   ;;  %s452_s1 = smov [#allocation11]  }
  0x11   :  { %s56_s18 = sshll.u32 %s451_s17, 4  ;;  %s66_s19 = sshll.u32 %s452_s1, 4  ;;  %s57_s18 = int_to_ptr.vmem [resolvable:$true] %s56_s18  ;;  %s67_s19 = int_to_ptr.vmem [resolvable:$true] %s66_s19 }
  0x12   :  { %59 = dma.hbm_to_vmem [thread:$0]  %s55_s14, 16, %s57_s18, [#allocation9]  }
  0x13   :  { %72 = dma.hbm_to_vmem [thread:$0]  %s65_s16, 2048, %s67_s19, [#allocation12], %s448_s8, %s448_s8, %s449_s9  }
  0x14   :  { %438 = dma.done.wait [#allocation6], 512  }
  0x15   :  { %439 = vsyncadd [#allocation6], 4294966784 }
  0x16   :  { %440 = dma.done.wait [#allocation9], 2064  }
  0x17   :  { %441 = vsyncadd [#allocation9], 4294965232 }
  0x18   :  { %442 = dma.done.wait [#allocation12], 2048  }
  0x19   :  { %443 = vsyncadd [#allocation12], 4294965248  ;;  %s92_s3 = sld [smem:[#allocation4]]  ;;  %v132_v5 = vlaneseq  ;;  %v189_v15 = vld [vmem:[#allocation8 + $0x78] sm:$0xff]  ;;  %v188_v16 = vld [vmem:[#allocation8 + $0x70] sm:$0xff]  ;;  %s453_s11 = smov [#allocation13]  }
  0x1a   :  { %s283_s20 = sld [smem:[#allocation4 + $0x1]]  ;;  %194 = vmatpush.msra.mxu0 %v189_v15  ;;  %v187_v17 = vld [vmem:[#allocation8 + $0x68] sm:$0xff]  ;;  %v186_v18 = vld [vmem:[#allocation8 + $0x60] sm:$0xff]  ;;  %v185_v19 = vld [vmem:[#allocation8 + $0x58] sm:$0xff]  ;;  %s261_s12 = sshll.u32 %s453_s11, 4  ;;  %s262_s12 = int_to_ptr.vmem [resolvable:$true] %s261_s12 }
  0x1b   :  { %s284_s21 = sld [smem:[#allocation4 + $0x2]]  ;;  %v504_v9 = vand.u32 127, %v132_v5  ;;  %v184_v20 = vld [vmem:[#allocation8 + $0x50] sm:$0xff]  ;;  %v183_v21 = vld [vmem:[#allocation8 + $0x48] sm:$0xff]  ;;  %v182_v22 = vld [vmem:[#allocation8 + $0x40] sm:$0xff]  ;;  %s263_s2 = sshll.u32 %s538_s6, 4  ;;  %s264_s2 = int_to_ptr.hbm [resolvable:$true] %s263_s2 }
  0x1c   :  { %s285_s22 = sld [smem:[#allocation4 + $0x3]]  ;;  %195 = vmatpush.msra.mxu0 %v188_v16  ;;  %v181_v23 = vld [vmem:[#allocation8 + $0x38] sm:$0xff]  ;;  %v180_v24 = vld [vmem:[#allocation8 + $0x30] sm:$0xff]  ;;  %v179_v25 = vld [vmem:[#allocation8 + $0x28] sm:$0xff] }
  0x1d   :  { %s286_s4 = sld [smem:[#allocation4 + $0x4]]  ;;  %vm135_vm0 = vcmp.ge.s32.totalorder %v504_v9, 16  ;;  %vm136_vm1 = vcmp.lt.s32.totalorder %v504_v9, 32  ;;  %vm134_vm3 = vcmp.lt.s32.totalorder %v504_v9, 16  ;;  %v178_v26 = vld [vmem:[#allocation8 + $0x20] sm:$0xff]  ;;  %v177_v27 = vld [vmem:[#allocation8 + $0x18] sm:$0xff] }
  0x1e   :  { %s287_s23 = sld [smem:[#allocation4 + $0x5]]  ;;  %vm510_vm2 = vmand %vm135_vm0, %vm136_vm1  ;;  %196 = vmatpush.msra.mxu0 %v187_v17  ;;  %v176_v28 = vld [vmem:[#allocation8 + $0x10] sm:$0xff]  ;;  %v175_v29 = vld [vmem:[#allocation8 + $0x8] sm:$0xff] }
  0x1f   :  { %s288_s24 = sld [smem:[#allocation4 + $0x6]]  ;;  %s93_s25 = scalar_lea.vmem [#allocation5], %s92_s3  ;;  %v174_v30 = vld [vmem:[#allocation8] sm:$0xff]  ;;  %v229_v33 = vld [vmem:[#allocation11 + $0x70] sm:$0xff]  ;;  %v228_v34 = vld [vmem:[#allocation11 + $0x68] sm:$0xff] }
  0x20   :  { %v94_v0 = vld [vmem:[%s93_s25] sm:$0x1]  ;;  %s289_s26 = sld [smem:[#allocation4 + $0x7]]  ;;  %s98_s27 = scalar_lea.vmem [#allocation5], %s283_s20  ;;  %197 = vmatpush.msra.mxu0 %v186_v18  ;;  %v230_v32 = vld [vmem:[#allocation11 + $0x78] sm:$0xff]  ;;  %v227_v35 = vld [vmem:[#allocation11 + $0x60] sm:$0xff] }
  0x21   :  { %95 = vst [vmem:[#allocation2] sm:$0x1] %v94_v0  ;;  %v99_v1 = vld [vmem:[%s98_s27] sm:$0x1]  ;;  %s103_s28 = scalar_lea.vmem [#allocation5], %s284_s21  ;;  %235 = vmatpush.msra.mxu1 %v230_v32  ;;  %v226_v37 = vld [vmem:[#allocation11 + $0x58] sm:$0xff] }
  0x22   :  { %100 = vst [vmem:[#allocation2 + $0x1] sm:$0x1] %v99_v1  ;;  %v104_v2 = vld [vmem:[%s103_s28] sm:$0x1]  ;;  %s108_s29 = scalar_lea.vmem [#allocation5], %s285_s22  ;;  %198 = vmatpush.msra.mxu0 %v185_v19  ;;  %v224_v42 = vld [vmem:[#allocation11 + $0x48] sm:$0xff] }
  0x23   :  { %105 = vst [vmem:[#allocation2 + $0x2] sm:$0x1] %v104_v2  ;;  %v109_v3 = vld [vmem:[%s108_s29] sm:$0x1]  ;;  %s113_s30 = scalar_lea.vmem [#allocation5], %s286_s4  ;;  %236 = vmatpush.msra.mxu1 %v229_v33  ;;  %v223_v44 = vld [vmem:[#allocation11 + $0x40] sm:$0xff] }
  0x24   :  { %110 = vst [vmem:[#allocation2 + $0x3] sm:$0x1] %v109_v3  ;;  %v114_v4 = vld [vmem:[%s113_s30] sm:$0x1]  ;;  %s118_s0 = scalar_lea.vmem [#allocation5], %s287_s23  ;;  %199 = vmatpush.msra.mxu0 %v184_v20  ;;  %v222_v47 = vld [vmem:[#allocation11 + $0x38] sm:$0xff] }
  0x25   :  { %115 = vst [vmem:[#allocation2 + $0x4] sm:$0x1] %v114_v4  ;;  %v119_v6 = vld [vmem:[%s118_s0] sm:$0x1]  ;;  %s123_s7 = scalar_lea.vmem [#allocation5], %s288_s24  ;;  %237 = vmatpush.msra.mxu1 %v228_v34  ;;  %v220_v53 = vld [vmem:[#allocation11 + $0x28] sm:$0xff] }
  0x26   :  { %120 = vst [vmem:[#allocation2 + $0x5] sm:$0x1] %v119_v6  ;;  %v124_v7 = vld [vmem:[%s123_s7] sm:$0x1]  ;;  %s128_s8 = scalar_lea.vmem [#allocation5], %s289_s26  ;;  %200 = vmatpush.msra.mxu0 %v183_v21  ;;  %v219_v55 = vld [vmem:[#allocation11 + $0x20] sm:$0xff] }
  0x27   :  { %125 = vst [vmem:[#allocation2 + $0x6] sm:$0x1] %v124_v7  ;;  %v129_v8 = vld [vmem:[%s128_s8] sm:$0x1]  ;;  %238 = vmatpush.msra.mxu1 %v227_v35  ;;  %v218_v58 = vld [vmem:[#allocation11 + $0x18] sm:$0xff]  ;;  %v216_v4 = vld [vmem:[#allocation11 + $0x8] sm:$0xff] }
  0x28   :  { %130 = vst [vmem:[#allocation2 + $0x7] sm:$0x1] %v129_v8  ;;  %201 = vmatpush.msra.mxu0 %v182_v22  ;;  %v225_v40 = vld [vmem:[#allocation11 + $0x50] sm:$0xff]  ;;  %v215_v5 = vld [vmem:[#allocation11] sm:$0xff]  ;;  %v298_v6 = vld [vmem:[#allocation10] ss:$0 sm:$0xff] }
  0x29   :  { %239 = vmatpush.msra.mxu1 %v226_v37  ;;  %v221_v50 = vld [vmem:[#allocation11 + $0x30] sm:$0xff] }
  0x2a   :  { %202 = vmatpush.msra.mxu0 %v181_v23  ;;  %v217_v3 = vld [vmem:[#allocation11 + $0x10] sm:$0xff] }
  0x2b   :  { %240 = vmatpush.msra.mxu1 %v225_v40  ;;  %v299_v11 = vld [vmem:[%s537_s5] ss:$0 sm:$0xff] }
  0x2c   :  { %203 = vmatpush.msra.mxu0 %v180_v24 }
  0x2d   :  { %241 = vmatpush.msra.mxu1 %v224_v42 }
  0x2e   :  { %204 = vmatpush.msra.mxu0 %v179_v25 }
  0x2f   :  { %v508_v10 = vld [vmem:[#allocation2] sm:$0xff]  ;;  %242 = vmatpush.msra.mxu1 %v223_v44 }
  0x30   :  { %v138_v12 = vmul.f32 %v508_v10, %v508_v10  ;;  %205 = vmatpush.msra.mxu0 %v178_v26 }
  0x31   :  { %243 = vmatpush.msra.mxu1 %v222_v47 }
  0x32   :  { %v142_v13 = vsel %vm510_vm2, %v138_v12, 0.0  ;;  %v139_v14 = vsel %vm134_vm3, %v138_v12, 0.0  ;;  %206 = vmatpush.msra.mxu0 %v177_v27 }
  0x33   :  { %143 = vadd.xlane.f32.xlu0 %v142_v13  ;;  %244 = vmatpush.msra.mxu1 %v221_v50 }
  0x34   :  { %207 = vmatpush.msra.mxu0 %v176_v28 }
  0x35   :  { %245 = vmatpush.msra.mxu1 %v220_v53 }
  0x36   :  { %208 = vmatpush.msra.mxu0 %v175_v29 }
  0x37   :  { %246 = vmatpush.msra.mxu1 %v219_v55 }
  0x38   :  { %209 = vmatpush.msra.mxu0 %v174_v30 }
  0x39   :  { %247 = vmatpush.msra.mxu1 %v218_v58 }
  0x3b   :  { %140 = vadd.xlane.f32.xlu0 %v139_v14  ;;  %248 = vmatpush.msra.mxu1 %v217_v3 }
  0x3d   :  { %249 = vmatpush.msra.mxu1 %v216_v4 }
  0x3f   :  { %250 = vmatpush.msra.mxu1 %v215_v5 }
  0xa6   :  { %v144_v31 = vpop.xlane.xlu0 %143 }
  0xa7   :  { %300 = vrsqrt.f32 %v144_v31  ;;  %vm165_vm5 = vweird.f32 %v144_v31  ;;  %vm158_vm9 = vcmp.gt.f32.partialorder %v144_v31, 9.0 }
  0xad   :  { %v301_v36 = vpop.eup %300 }
  0xae   :  { %v160_v38 = vmul.f32 %v301_v36, %v144_v31  ;;  %v141_v39 = vpop.xlane.xlu0 %140  ;;  %vm166_vm4 = vweird.f32 %v301_v36 }
  0xaf   :  { %302 = vrsqrt.f32 %v141_v39  ;;  %vm167_vm6 = vmor %vm165_vm5, %vm166_vm4  ;;  %vm152_vm8 = vweird.f32 %v141_v39  ;;  %vm145_vm11 = vcmp.gt.f32.partialorder %v141_v39, 9.0 }
  0xb0   :  { %v161_v41 = vmul.f32 %v301_v36, %v160_v38 }
  0xb2   :  { %v162_v43 = vmul.f32 0.5, %v161_v41 }
  0xb4   :  { %v163_v45 = vsub.f32 1.5, %v162_v43 }
  0xb5   :  { %v303_v46 = vpop.eup %302 }
  0xb6   :  { %v164_v48 = vmul.f32 %v301_v36, %v163_v45  ;;  %v147_v49 = vmul.f32 %v303_v46, %v141_v39  ;;  %vm153_vm7 = vweird.f32 %v303_v46 }
  0xb7   :  { %vm154_vm10 = vmor %vm152_vm8, %vm153_vm7 }
  0xb8   :  { %v148_v51 = vmul.f32 %v303_v46, %v147_v49  ;;  %v168_v52 = vsel %vm167_vm6, %v301_v36, %v164_v48 }
  0xb9   :  { %v169_v57 = vmul.f32 3.0, %v168_v52 }
  0xba   :  { %v149_v54 = vmul.f32 0.5, %v148_v51 }
  0xbb   :  { %v170_v61 = vsel %vm158_vm9, %v169_v57, 1.0 }
  0xbc   :  { %v150_v56 = vsub.f32 1.5, %v149_v54  ;;  %v171_v0 = vsel %vm510_vm2, %v170_v61, 1.0 }
  0xbe   :  { %v151_v59 = vmul.f32 %v303_v46, %v150_v56 }
  0xc0   :  { %v155_v60 = vsel %vm154_vm10, %v303_v46, %v151_v59 }
  0xc1   :  { %v156_v62 = vmul.f32 3.0, %v155_v60 }
  0xc3   :  { %v157_v63 = vsel %vm145_vm11, %v156_v62, 1.0 }
  0xc4   :  { %v172_v1 = vsel %vm134_vm3, %v157_v63, %v171_v0 }
  0xc5   :  { %v173_v2 = vmul.f32 %v172_v1, %v508_v10 }
  0xc7   :  { %210 = vmatmul.f32.vlgmr.msra.gmra.mxu0 %v173_v2 }
 0x144   :  { %v211_v7 = vpop.f32.mrf.mxu0 }
 0x145   :  { %v212_v8 = vadd.f32 %v298_v6, %v211_v7 }
 0x147   :  { %v214_v12 = vmax.f32 %v212_v8, 0.0 }
 0x149   :  { %251 = vmatmul.f32.vlgmr.msra.gmra.mxu1 %v214_v12 }
 0x1c6   :  { %v252_v9 = vpop.f32.mrf.mxu1 }
 0x1c7   :  { %v253_v10 = vadd.f32 %v299_v11, %v252_v9 }
 0x1c9   :  { %255 = vst [vmem:[#allocation13] sm:$0xff] %v253_v10 }
 0x1ca   :  { %266 = dma.vmem_to_hbm [thread:$0]  %s262_s12, 128, %s264_s2, [#allocation7]  }
 0x1cb   :  { %444 = dma.done.wait [#allocation7], 128  }
 0x1cc   :  { %445 = vsyncadd [#allocation7], 4294967168 }
 0x1cd   :  { %271 = vsyncpa [#allocation6], 1 }
 0x1ce   :  { %272 = vsyncpa [#allocation9], 1 }
 0x1cf   :  { %273 = vsyncpa [#allocation12], 1 }
 0x1d0   :  { %274 = vsyncpa [#allocation7], 1 }

</bundles_post_ra>
